<compile_context>
chip_gen: v5e
topology: v5e:2x2
jax: 0.10.0
libtpu: 0.0.40
codegen_flags: <defaults>
</compile_context>

<pallas_src>
import functools

import jax
import jax.numpy as jnp
from jax.experimental import pallas as pl
from jax.experimental.pallas import tpu as pltpu


def _cdiv(a, b):
    return -(-a // b)


def _round_up(x, m):
    return ((x + m - 1) // m) * m


def _mlp_kernel(*refs, dropout_p, training, seed, tile_rows, compute_dtype,
                num_layers):
    """Fused MLP forward for one batch tile.

    refs = (x_ref, W1_ref, b1_ref, ..., WL_ref, bL_ref, o_ref)
    h_{l+1} = dropout(relu(h_l @ W_l + b_l))   for l < L
    y       = sigmoid(h_{L-1} @ W_L + b_L)
    """
    x_ref = refs[0]
    o_ref = refs[-1]
    wb_refs = refs[1:-1]

    use_dropout = training and dropout_p > 0.0

    if use_dropout:
        # Stateless counter-based hash of (seed, global_row, col, layer).
        # Row/column pre-mix is hoisted out of the per-layer dropout so each
        # hidden layer only pays: broadcast-XOR + one full-tile u32 multiply +
        # two xor-shifts + compare + select.
        # keep prob differs from (1-p) by < 2^-32 due to int truncation.
        threshold = jnp.uint32(min(int(dropout_p * 4294967296.0), 0xFFFFFFFF))
        scale = jnp.float32(1.0 / (1.0 - dropout_p))
        row0 = (pl.program_id(0) * tile_rows).astype(jnp.uint32)
        seed_salt = jnp.uint32((seed * 0x27D4EB2F) & 0xFFFFFFFF)
        row_hash = (((jax.lax.broadcasted_iota(jnp.uint32, (tile_rows, 1), 0)
                      + row0) * jnp.uint32(0x9E3779B1)) ^ seed_salt)
        _col_hash_cache = {}

        def _col_hash(width):
            # Manual CSE across layers with the same (padded) hidden width.
            if width not in _col_hash_cache:
                _col_hash_cache[width] = (
                    jax.lax.broadcasted_iota(jnp.uint32, (1, width), 1)
                    * jnp.uint32(0x85EBCA77))
            return _col_hash_cache[width]

    def dropout(h, layer_salt):
        if not use_dropout:
            return h  # nn.Dropout in eval mode is identity
        # TODO(synk): matches nn.Dropout semantics (keep prob 1-p, scale
        # 1/(1-p)) but cannot bit-match torch's RNG stream.
        bits = row_hash ^ _col_hash(h.shape[1]) ^ jnp.uint32(
            (layer_salt * 0x165667B1) & 0xFFFFFFFF)
        # Trimmed finalizer: rows/cols are already pre-mixed by odd constants,
        # so one multiply round gives enough decorrelation for dropout.
        bits = (bits ^ (bits >> 15)) * jnp.uint32(0x2C1B3C6D)
        bits = bits ^ (bits >> 13)
        keep = bits >= threshold
        return jnp.where(keep, h * scale, 0.0)

    # x arrives already in compute_dtype (cast once in the wrapper).
    h = x_ref[...]
    if h.dtype != compute_dtype:
        h = h.astype(compute_dtype)
    for layer in range(num_layers):
        w_ref = wb_refs[2 * layer]
        b_ref = wb_refs[2 * layer + 1]
        # compute_dtype operands on the MXU, f32 accumulation; bias/ReLU/
        # dropout stay f32.
        h = jnp.dot(h, w_ref[...], preferred_element_type=jnp.float32) + b_ref[...]
        if layer < num_layers - 1:
            h = jnp.maximum(h, 0.0)
            h = dropout(h, layer + 1)
            h = h.astype(compute_dtype)

    o_ref[...] = jax.nn.sigmoid(h).astype(o_ref.dtype)


def sequential_model_forward(x, params, *, dropout_p=0.25, training=False,
                             seed=0, tile_rows=1024,
                             compute_dtype=jnp.bfloat16, out_dtype=None,
                             pad_hidden=True):
    """Forward pass of SequentialModelGPU.

    x:      (B, input_dim) float32
    params: list of (W, b) with W: (in, out) float32 (transposed vs torch),
            b: (1, out) float32. Last layer is the output Linear.
    """
    B, in_dim = x.shape
    num_layers = len(params)
    out_dim = params[-1][0].shape[1]
    if out_dtype is None:
        # Sigmoid outputs live in [0,1]; bf16 halves the dominant HBM
        # writeback stream (biggest relative win on v5e).
        out_dtype = compute_dtype

    # --- lane-dense widths: pad hidden + output dims to multiples of 128 ----
    # Zero-padding extra columns (and the matching rows of the next W) is
    # numerically exact.
    prepared = []
    prev_pad = 0
    for layer, (W, b) in enumerate(params):
        W = jnp.asarray(W, jnp.float32)
        b = jnp.asarray(b, jnp.float32).reshape(1, -1)
        if prev_pad:
            W = jnp.pad(W, ((0, prev_pad), (0, 0)))
        cols = W.shape[1]
        if layer == num_layers - 1 or pad_hidden:
            target = _round_up(cols, 128)
        else:
            target = cols
        col_pad = target - cols
        if col_pad:
            W = jnp.pad(W, ((0, 0), (0, col_pad)))
            b = jnp.pad(b, ((0, 0), (0, col_pad)))
        prev_pad = col_pad
        # Cast weights to the MXU compute dtype once (wrapper-side, not per
        # grid step). Biases stay f32: the add happens on the f32 accumulator.
        prepared.append((W.astype(compute_dtype), b))
    padded_out = prepared[-1][0].shape[1]

    # --- batch tiling: big, balanced tiles; grid >= 2 when B is moderate ----
    n_tiles = max(1, _cdiv(B, tile_rows))
    if n_tiles == 1 and B >= 256:
        n_tiles = 2           # let v7x's 2 TensorCores both get work
    tb = _round_up(_cdiv(B, n_tiles), 8)     # f32/bf16 sublane multiple
    b_pad = _round_up(B, tb)                 # waste bounded to <8 rows/tile
    grid = (b_pad // tb,)

    # Cast x once so the input DMA stream is half-width (bf16 default).
    x = x.astype(compute_dtype)
    if b_pad != B:
        x = jnp.pad(x, ((0, b_pad - B), (0, 0)))

    in_specs = [pl.BlockSpec((tb, in_dim), lambda i: (i, 0))]
    flat_inputs = [x]
    for W, b in prepared:
        # Constant (0,0) index maps -> weights/biases stay VMEM-resident.
        in_specs.append(pl.BlockSpec(W.shape, lambda i: (0, 0)))
        in_specs.append(pl.BlockSpec(b.shape, lambda i: (0, 0)))
        flat_inputs.extend([W, b])

    kernel = functools.partial(
        _mlp_kernel,
        dropout_p=float(dropout_p),
        training=bool(training),
        seed=int(seed),
        tile_rows=tb,
        compute_dtype=compute_dtype,
        num_layers=num_layers,
    )

    # Advisory cost hint for XLA's scheduler around the custom call.
    flops = 2 * b_pad * sum(int(W.shape[0]) * int(W.shape[1])
                            for W, _ in prepared)
    bytes_accessed = (
        x.size * x.dtype.itemsize
        + b_pad * padded_out * jnp.dtype(out_dtype).itemsize
        + sum(W.size * W.dtype.itemsize + b.size * b.dtype.itemsize
              for W, b in prepared))
    cost = pl.CostEstimate(flops=flops,
                           transcendentals=b_pad * padded_out,
                           bytes_accessed=bytes_accessed)

    out = pl.pallas_call(
        kernel,
        out_shape=jax.ShapeDtypeStruct((b_pad, padded_out), out_dtype),
        grid=grid,
        in_specs=in_specs,
        out_specs=pl.BlockSpec((tb, padded_out), lambda i: (i, 0)),
        compiler_params=pltpu.CompilerParams(
            dimension_semantics=("parallel",)),   # no reduction axis
        cost_estimate=cost,
    )(*flat_inputs)

    return out[:B, :out_dim]


def init_params(key, input_dim, hidden_states, output_dim):
    """Deterministic init mirroring nn.Linear: W as (in, out), b as (1, out)."""
    dims = [input_dim] + list(hidden_states) + [output_dim]
    params = []
    for i in range(len(dims) - 1):
        key, kw, kb = jax.random.split(key, 3)
        bound = 1.0 / float(dims[i]) ** 0.5
        W = jax.random.uniform(kw, (dims[i], dims[i + 1]), jnp.float32, -bound, bound)
        b = jax.random.uniform(kb, (1, dims[i + 1]), jnp.float32, -bound, bound)
        params.append((W, b))
    return params


if __name__ == "__main__":
    # SequentialModelGPU(input_dim=32, output_dim=8, hidden_states=[64, 64])
    input_dim = 32
    hidden_states = [64, 64]
    output_dim = 8
    dropout_p = 0.25

    key = jax.random.PRNGKey(0)
    key, kx, kx2 = jax.random.split(key, 3)
    params = init_params(key, input_dim, hidden_states, output_dim)

    def jax_ref(inp):
        h = inp
        for i, (W, b) in enumerate(params):
            h = h @ W + b
            if i < len(params) - 1:
                h = jnp.maximum(h, 0.0)
        return jax.nn.sigmoid(h)

    # 1) small batch, f32 compute + f32 output: exact correctness check.
    x = jax.random.normal(kx, (8, input_dim), dtype=jnp.float32)
    out_f32 = jax.block_until_ready(
        sequential_model_forward(x, params, dropout_p=dropout_p,
                                 training=False, compute_dtype=jnp.float32,
                                 out_dtype=jnp.float32))
    assert out_f32.shape == (8, output_dim)
    assert jnp.allclose(out_f32, jax_ref(x), atol=1e-5, rtol=1e-5), "f32 mismatch"

    # 2) default path (bf16 compute, bf16 lane-dense output): relaxed tolerance.
    out_bf16 = jax.block_until_ready(
        sequential_model_forward(x, params, dropout_p=dropout_p,
                                 training=False))
    assert out_bf16.shape == (8, output_dim)
    assert jnp.allclose(out_bf16.astype(jnp.float32), jax_ref(x),
                        atol=5e-2, rtol=5e-2), "bf16 mismatch"

    # 3) non-multiple batch: exercises balanced tiling + 2-step grid.
    xb = jax.random.normal(kx2, (300, input_dim), dtype=jnp.float32)
    out_big = jax.block_until_ready(
        sequential_model_forward(xb, params, dropout_p=dropout_p,
                                 training=False, compute_dtype=jnp.float32,
                                 out_dtype=jnp.float32))
    assert out_big.shape == (300, output_dim)
    assert jnp.allclose(out_big, jax_ref(xb), atol=1e-5, rtol=1e-5), "tiled mismatch"

    # 4) train-mode dropout path (stateless hash PRNG, per-tile row offsets).
    out_train = jax.block_until_ready(
        sequential_model_forward(xb, params, dropout_p=dropout_p,
                                 training=True, seed=123,
                                 compute_dtype=jnp.float32,
                                 out_dtype=jnp.float32))
    assert out_train.shape == (300, output_dim)
    assert bool(jnp.all(jnp.isfinite(out_train)))
    assert bool(jnp.all((out_train >= 0.0) & (out_train <= 1.0)))

    print("KERNEL_OK")
</pallas_src>

<mosaic_0001>
module attributes {stable_mosaic.version = 11 : i64} {
  func.func @_mlp_kernel(%arg0: i32, %arg1: memref<8x32xf32, #tpu.memory_space<vmem>>, %arg2: memref<32x128xf32, #tpu.memory_space<vmem>>, %arg3: memref<1x128xf32, #tpu.memory_space<vmem>>, %arg4: memref<128x128xf32, #tpu.memory_space<vmem>>, %arg5: memref<1x128xf32, #tpu.memory_space<vmem>>, %arg6: memref<128x128xf32, #tpu.memory_space<vmem>>, %arg7: memref<1x128xf32, #tpu.memory_space<vmem>>, %arg8: memref<8x128xf32, #tpu.memory_space<vmem>>) attributes {dimension_semantics = [#tpu.dimension_semantics<parallel>], iteration_bounds = array<i64: 1>, scalar_prefetch = 0 : i64, scratch_operands = 0 : i64, tpu.core_type = #tpu.core_type<tc>, window_params = [{transform_indices = @transform_0, window_bounds = array<i64: 8, 32>}, {pipeline_mode = #tpu.pipeline_mode<synchronous>, transform_indices = @transform_1, window_bounds = array<i64: 32, 128>}, {pipeline_mode = #tpu.pipeline_mode<synchronous>, transform_indices = @transform_2, window_bounds = array<i64: 1, 128>}, {pipeline_mode = #tpu.pipeline_mode<synchronous>, transform_indices = @transform_3, window_bounds = array<i64: 128, 128>}, {pipeline_mode = #tpu.pipeline_mode<synchronous>, transform_indices = @transform_4, window_bounds = array<i64: 1, 128>}, {pipeline_mode = #tpu.pipeline_mode<synchronous>, transform_indices = @transform_5, window_bounds = array<i64: 128, 128>}, {pipeline_mode = #tpu.pipeline_mode<synchronous>, transform_indices = @transform_6, window_bounds = array<i64: 1, 128>}, {transform_indices = @transform_7, window_bounds = array<i64: 8, 128>}]} {
    %c0 = arith.constant 0 : index
    %c0_0 = arith.constant 0 : index
    %0 = vector.load %arg1[%c0, %c0_0] : memref<8x32xf32, #tpu.memory_space<vmem>>, vector<8x32xf32>
    %c0_1 = arith.constant 0 : index
    %c0_2 = arith.constant 0 : index
    %1 = vector.load %arg2[%c0_1, %c0_2] : memref<32x128xf32, #tpu.memory_space<vmem>>, vector<32x128xf32>
    %cst = arith.constant dense<0.000000e+00> : vector<8x128xf32>
    %2 = tpu.matmul %0, %1, %cst {dimension_numbers = #tpu.dot_dimension_numbers<[1], [0], [0], [1], [0, 0, 1, 1], [], []>} : vector<8x32xf32>, vector<32x128xf32>, vector<8x128xf32> -> vector<8x128xf32>
    %c0_3 = arith.constant 0 : index
    %c0_4 = arith.constant 0 : index
    %3 = vector.load %arg3[%c0_3, %c0_4] : memref<1x128xf32, #tpu.memory_space<vmem>>, vector<1x128xf32>
    %4 = vector.broadcast %3 : vector<1x128xf32> to vector<8x128xf32>
    %5 = arith.addf %2, %4 : vector<8x128xf32>
    %cst_5 = arith.constant 0.000000e+00 : f32
    %6 = vector.broadcast %cst_5 : f32 to vector<8x128xf32>
    %7 = arith.maximumf %5, %6 : vector<8x128xf32>
    %c0_6 = arith.constant 0 : index
    %c0_7 = arith.constant 0 : index
    %8 = vector.load %arg4[%c0_6, %c0_7] : memref<128x128xf32, #tpu.memory_space<vmem>>, vector<128x128xf32>
    %cst_8 = arith.constant dense<0.000000e+00> : vector<8x128xf32>
    %9 = tpu.matmul %7, %8, %cst_8 {dimension_numbers = #tpu.dot_dimension_numbers<[1], [0], [0], [1], [0, 0, 1, 1], [], []>} : vector<8x128xf32>, vector<128x128xf32>, vector<8x128xf32> -> vector<8x128xf32>
    %c0_9 = arith.constant 0 : index
    %c0_10 = arith.constant 0 : index
    %10 = vector.load %arg5[%c0_9, %c0_10] : memref<1x128xf32, #tpu.memory_space<vmem>>, vector<1x128xf32>
    %11 = vector.broadcast %10 : vector<1x128xf32> to vector<8x128xf32>
    %12 = arith.addf %9, %11 : vector<8x128xf32>
    %cst_11 = arith.constant 0.000000e+00 : f32
    %13 = vector.broadcast %cst_11 : f32 to vector<8x128xf32>
    %14 = arith.maximumf %12, %13 : vector<8x128xf32>
    %c0_12 = arith.constant 0 : index
    %c0_13 = arith.constant 0 : index
    %15 = vector.load %arg6[%c0_12, %c0_13] : memref<128x128xf32, #tpu.memory_space<vmem>>, vector<128x128xf32>
    %cst_14 = arith.constant dense<0.000000e+00> : vector<8x128xf32>
    %16 = tpu.matmul %14, %15, %cst_14 {dimension_numbers = #tpu.dot_dimension_numbers<[1], [0], [0], [1], [0, 0, 1, 1], [], []>} : vector<8x128xf32>, vector<128x128xf32>, vector<8x128xf32> -> vector<8x128xf32>
    %c0_15 = arith.constant 0 : index
    %c0_16 = arith.constant 0 : index
    %17 = vector.load %arg7[%c0_15, %c0_16] : memref<1x128xf32, #tpu.memory_space<vmem>>, vector<1x128xf32>
    %18 = vector.broadcast %17 : vector<1x128xf32> to vector<8x128xf32>
    %19 = arith.addf %16, %18 : vector<8x128xf32>
    %20 = arith.negf %19 : vector<8x128xf32>
    %21 = math.exp %20 : vector<8x128xf32>
    %cst_17 = arith.constant 1.000000e+00 : f32
    %22 = vector.broadcast %cst_17 : f32 to vector<8x128xf32>
    %23 = arith.addf %22, %21 : vector<8x128xf32>
    %24 = arith.divf %22, %23 : vector<8x128xf32>
    %c0_18 = arith.constant 0 : index
    %c0_19 = arith.constant 0 : index
    %25 = vector.load %arg8[%c0_18, %c0_19] : memref<8x128xf32, #tpu.memory_space<vmem>>, vector<8x128xf32>
    tpu.vector_store %arg8[%c0_18, %c0_19], %24 {strides = array<i32>} : memref<8x128xf32, #tpu.memory_space<vmem>>, vector<8x128xf32>,
    return
  }
  func.func @transform_0(%arg0: i32) -> (i32, i32) {
    %c0_i32 = arith.constant 0 : i32
    %c0_i32_0 = arith.constant 0 : i32
    return %arg0, %c0_i32 : i32, i32
  }
  func.func @transform_1(%arg0: i32) -> (i32, i32) {
    %c0_i32 = arith.constant 0 : i32
    %c0_i32_0 = arith.constant 0 : i32
    %c0_i32_1 = arith.constant 0 : i32
    return %c0_i32, %c0_i32_0 : i32, i32
  }
  func.func @transform_2(%arg0: i32) -> (i32, i32) {
    %c0_i32 = arith.constant 0 : i32
    %c0_i32_0 = arith.constant 0 : i32
    %c0_i32_1 = arith.constant 0 : i32
    return %c0_i32, %c0_i32_0 : i32, i32
  }
  func.func @transform_3(%arg0: i32) -> (i32, i32) {
    %c0_i32 = arith.constant 0 : i32
    %c0_i32_0 = arith.constant 0 : i32
    %c0_i32_1 = arith.constant 0 : i32
    return %c0_i32, %c0_i32_0 : i32, i32
  }
  func.func @transform_4(%arg0: i32) -> (i32, i32) {
    %c0_i32 = arith.constant 0 : i32
    %c0_i32_0 = arith.constant 0 : i32
    %c0_i32_1 = arith.constant 0 : i32
    return %c0_i32, %c0_i32_0 : i32, i32
  }
  func.func @transform_5(%arg0: i32) -> (i32, i32) {
    %c0_i32 = arith.constant 0 : i32
    %c0_i32_0 = arith.constant 0 : i32
    %c0_i32_1 = arith.constant 0 : i32
    return %c0_i32, %c0_i32_0 : i32, i32
  }
  func.func @transform_6(%arg0: i32) -> (i32, i32) {
    %c0_i32 = arith.constant 0 : i32
    %c0_i32_0 = arith.constant 0 : i32
    %c0_i32_1 = arith.constant 0 : i32
    return %c0_i32, %c0_i32_0 : i32, i32
  }
  func.func @transform_7(%arg0: i32) -> (i32, i32) {
    %c0_i32 = arith.constant 0 : i32
    %c0_i32_0 = arith.constant 0 : i32
    return %arg0, %c0_i32 : i32, i32
  }
}

</mosaic_0001>

<bundles_post_ra>
// kernel: tpu_custom_call.1
= control target key start
LH: loop header
LB: loop body
LE: loop exit
PB: predicated region body
PF: predicated region fallthrough
CT: control target
= control target key end

     0   :  { %12 = vsyncpa [#allocation3], 0  ;;  %s457_s0 = inlined_call_operand.hbm [shape: f32[8,32], index: 0, kind: input, shape index: {}]   ;;  %s458_s1 = inlined_call_operand.hbm [shape: f32[32,128], index: 1, kind: input, shape index: {}]   ;;  %s459_s2 = inlined_call_operand.vmem [shape: f32[1,128], index: 2, kind: input, shape index: {}]   ;;  %s460_s3 = inlined_call_operand.hbm [shape: f32[128,128], index: 3, kind: input, shape index: {}]   ;;  %s461_s4 = inlined_call_operand.vmem [shape: f32[1,128], index: 4, kind: input, shape index: {}]   ;;  %s462_s5 = inlined_call_operand.hbm [shape: f32[128,128], index: 5, kind: input, shape index: {}]   ;;  %s463_s6 = inlined_call_operand.vmem [shape: f32[1,128], index: 6, kind: input, shape index: {}]   ;;  %s464_s7 = inlined_call_operand.hbm [shape: f32[8,128], index: 7, kind: output, shape index: {}]  }
   0x1   :  { %13 = vsyncpa [#allocation6], 0 }
   0x2   :  { %14 = vsyncpa [#allocation9], 0  ;;  %s31_s26 = sshll.u32 %s458_s1, 4  ;;  %s32_s26 = int_to_ptr.hbm [resolvable:$true] %s31_s26 }
   0x3   :  { %15 = vsyncpa [#allocation4], 0  ;;  %s386_s27 = smov [#allocation5]   ;;  %s21_s8 = sshll.u32 %s457_s0, 4  ;;  %s22_s8 = int_to_ptr.hbm [resolvable:$true] %s21_s8 }
   0x4   :  { %s33_s28 = sshll.u32 %s386_s27, 4  ;;  %s387_s9 = smov 128   ;;  %s34_s28 = int_to_ptr.vmem [resolvable:$true] %s33_s28 }
   0x5   :  { %s388_s10 = smov 8   ;;  %s389_s11 = smov [#allocation2]  }
   0x6   :  { %39 = dma.hbm_to_vmem [thread:$0]  %s32_s26, 512, %s34_s28, [#allocation6], %s387_s9, %s387_s9, %s388_s10  }
   0x7   :  { %s23_s12 = sshll.u32 %s389_s11, 4  ;;  %s46_s15 = sshll.u32 %s460_s3, 4  ;;  %s24_s12 = int_to_ptr.vmem [resolvable:$true] %s23_s12  ;;  %s47_s15 = int_to_ptr.hbm [resolvable:$true] %s46_s15 }
   0x8   :  { %26 = dma.hbm_to_vmem [thread:$0]  %s22_s8, 128, %s24_s12, [#allocation3]  }
   0x9   :  { %s61_s17 = sshll.u32 %s462_s5, 4  ;;  %s390_s18 = smov [#allocation7]   ;;  %s62_s17 = int_to_ptr.hbm [resolvable:$true] %s61_s17 }
   0xa   :  { %s48_s19 = sshll.u32 %s390_s18, 4  ;;  %s391_s0 = smov [#allocation8]   ;;  %s49_s19 = int_to_ptr.vmem [resolvable:$true] %s48_s19 }
   0xb   :  { %54 = dma.hbm_to_vmem [thread:$0]  %s47_s15, 2048, %s49_s19, [#allocation6], %s387_s9, %s387_s9, %s388_s10  }
   0xc   :  { %s63_s20 = sshll.u32 %s391_s0, 4  ;;  %s64_s20 = int_to_ptr.vmem [resolvable:$true] %s63_s20 }
   0xd   :  { %69 = dma.hbm_to_vmem [thread:$0]  %s62_s17, 2048, %s64_s20, [#allocation9], %s387_s9, %s387_s9, %s388_s10  }
   0xe   :  { %378 = dma.done.wait [#allocation3], 128  }
   0xf   :  { %379 = vsyncadd [#allocation3], 4294967168 }
  0x10   :  { %380 = dma.done.wait [#allocation6], 2560  }
  0x11   :  { %381 = vsyncadd [#allocation6], 4294964736 }
  0x12   :  { %382 = dma.done.wait [#allocation9], 2048  }
  0x13   :  { %383 = vsyncadd [#allocation9], 4294965248  ;;  %v92_v0 = vld [vmem:[#allocation5 + $0x18] sm:$0xff]  ;;  %v91_v1 = vld [vmem:[#allocation5 + $0x10] sm:$0xff]  ;;  %vm97_vm0 = vcmask 261120  }
  0x14   :  { %113 = vmatpush.msra.mxu0 %v92_v0  ;;  %v137_v2 = vld [vmem:[#allocation7 + $0x78] sm:$0xff]  ;;  %v90_v3 = vld [vmem:[#allocation5 + $0x8] sm:$0xff]  ;;  %v136_v4 = vld [vmem:[#allocation7 + $0x70] sm:$0xff] }
  0x15   :  { %142 = vmatpush.msra.mxu1 %v137_v2  ;;  %v135_v5 = vld [vmem:[#allocation7 + $0x68] sm:$0xff]  ;;  %v89_v6 = vld [vmem:[#allocation5] sm:$0xff]  ;;  %v88_v7 = vld [vmem:[#allocation2] sm:$0xff] }
  0x16   :  { %114 = vmatpush.msra.mxu0 %v91_v1  ;;  %v134_v8 = vld [vmem:[#allocation7 + $0x60] sm:$0xff]  ;;  %v133_v9 = vld [vmem:[#allocation7 + $0x58] sm:$0xff]  ;;  %v132_v10 = vld [vmem:[#allocation7 + $0x50] sm:$0xff] }
  0x17   :  { %143 = vmatpush.msra.mxu1 %v136_v4  ;;  %v131_v11 = vld [vmem:[#allocation7 + $0x48] sm:$0xff]  ;;  %v130_v12 = vld [vmem:[#allocation7 + $0x40] sm:$0xff]  ;;  %v129_v13 = vld [vmem:[#allocation7 + $0x38] sm:$0xff] }
  0x18   :  { %115 = vmatpush.msra.mxu0 %v90_v3  ;;  %v128_v14 = vld [vmem:[#allocation7 + $0x30] sm:$0xff]  ;;  %v127_v15 = vld [vmem:[#allocation7 + $0x28] sm:$0xff]  ;;  %v126_v16 = vld [vmem:[#allocation7 + $0x20] sm:$0xff] }
  0x19   :  { %144 = vmatpush.msra.mxu1 %v135_v5  ;;  %v125_v17 = vld [vmem:[#allocation7 + $0x18] sm:$0xff]  ;;  %v124_v18 = vld [vmem:[#allocation7 + $0x10] sm:$0xff]  ;;  %v123_v19 = vld [vmem:[#allocation7 + $0x8] sm:$0xff] }
  0x1a   :  { %116 = vmatpush.msra.mxu0 %v89_v6  ;;  %v122_v20 = vld [vmem:[#allocation7] sm:$0xff]  ;;  %v178_v21 = vld [vmem:[#allocation8 + $0x78] sm:$0xff]  ;;  %v177_v22 = vld [vmem:[#allocation8 + $0x70] sm:$0xff] }
  0x1b   :  { %242 = vmatmul.msk.f32.vlgmr.msra.gmra.mxu0 %vm97_vm0, %v88_v7  ;;  %145 = vmatpush.msra.mxu1 %v134_v8  ;;  %v176_v23 = vld [vmem:[#allocation8 + $0x68] sm:$0xff]  ;;  %v175_v24 = vld [vmem:[#allocation8 + $0x60] sm:$0xff]  ;;  %v174_v25 = vld [vmem:[#allocation8 + $0x58] sm:$0xff] }
  0x1c   :  { %183 = vmatpush.msra.mxu2 %v178_v21  ;;  %v173_v26 = vld [vmem:[#allocation8 + $0x50] sm:$0xff]  ;;  %v172_v27 = vld [vmem:[#allocation8 + $0x48] sm:$0xff]  ;;  %v171_v28 = vld [vmem:[#allocation8 + $0x40] sm:$0xff] }
  0x1d   :  { %146 = vmatpush.msra.mxu1 %v133_v9  ;;  %v170_v29 = vld [vmem:[#allocation8 + $0x38] sm:$0xff]  ;;  %v169_v30 = vld [vmem:[#allocation8 + $0x30] sm:$0xff]  ;;  %v168_v31 = vld [vmem:[#allocation8 + $0x28] sm:$0xff] }
  0x1e   :  { %184 = vmatpush.msra.mxu2 %v177_v22  ;;  %v167_v32 = vld [vmem:[#allocation8 + $0x20] sm:$0xff]  ;;  %v166_v33 = vld [vmem:[#allocation8 + $0x18] sm:$0xff]  ;;  %v165_v38 = vld [vmem:[#allocation8 + $0x10] sm:$0xff] }
  0x1f   :  { %147 = vmatpush.msra.mxu1 %v132_v10  ;;  %v251_v34 = vld [vmem:[%s459_s2] ss:$0 sm:$0xff]  ;;  %v164_v39 = vld [vmem:[#allocation8 + $0x8] sm:$0xff]  ;;  %v163_v40 = vld [vmem:[#allocation8] sm:$0xff] }
  0x20   :  { %185 = vmatpush.msra.mxu2 %v176_v23  ;;  %v252_v41 = vld [vmem:[%s461_s4] ss:$0 sm:$0xff]  ;;  %s392_s4 = smov [#allocation10]  }
  0x21   :  { %148 = vmatpush.msra.mxu1 %v131_v11  ;;  %v253_v45 = vld [vmem:[%s463_s6] ss:$0 sm:$0xff]  ;;  %s228_s24 = sshll.u32 %s392_s4, 4  ;;  %s230_s6 = sshll.u32 %s464_s7, 4  ;;  %s229_s24 = int_to_ptr.vmem [resolvable:$true] %s228_s24  ;;  %s231_s6 = int_to_ptr.hbm [resolvable:$true] %s230_s6 }
  0x22   :  { %186 = vmatpush.msra.mxu2 %v175_v24 }
  0x23   :  { %149 = vmatpush.msra.mxu1 %v130_v12 }
  0x24   :  { %187 = vmatpush.msra.mxu2 %v174_v25 }
  0x25   :  { %150 = vmatpush.msra.mxu1 %v129_v13 }
  0x26   :  { %188 = vmatpush.msra.mxu2 %v173_v26 }
  0x27   :  { %151 = vmatpush.msra.mxu1 %v128_v14 }
  0x28   :  { %189 = vmatpush.msra.mxu2 %v172_v27 }
  0x29   :  { %152 = vmatpush.msra.mxu1 %v127_v15 }
  0x2a   :  { %190 = vmatpush.msra.mxu2 %v171_v28 }
  0x2b   :  { %153 = vmatpush.msra.mxu1 %v126_v16 }
  0x2c   :  { %191 = vmatpush.msra.mxu2 %v170_v29 }
  0x2d   :  { %154 = vmatpush.msra.mxu1 %v125_v17 }
  0x2e   :  { %192 = vmatpush.msra.mxu2 %v169_v30 }
  0x2f   :  { %155 = vmatpush.msra.mxu1 %v124_v18 }
  0x30   :  { %193 = vmatpush.msra.mxu2 %v168_v31 }
  0x31   :  { %156 = vmatpush.msra.mxu1 %v123_v19 }
  0x32   :  { %194 = vmatpush.msra.mxu2 %v167_v32 }
  0x33   :  { %157 = vmatpush.msra.mxu1 %v122_v20 }
  0x34   :  { %195 = vmatpush.msra.mxu2 %v166_v33 }
  0x36   :  { %196 = vmatpush.msra.mxu2 %v165_v38 }
  0x38   :  { %197 = vmatpush.msra.mxu2 %v164_v39 }
  0x3a   :  { %198 = vmatpush.msra.mxu2 %v163_v40 }
  0x98   :  { %v118_v35 = vpop.f32.mrf.mxu0 }
  0x99   :  { %v119_v36 = vadd.f32 %v251_v34, %v118_v35 }
  0x9b   :  { %v121_v37 = vmax.f32 %v119_v36, 0.0 }
  0x9d   :  { %158 = vmatmul.f32.vlgmr.msra.gmra.mxu1 %v121_v37 }
 0x11a   :  { %v159_v42 = vpop.f32.mrf.mxu1 }
 0x11b   :  { %v160_v43 = vadd.f32 %v252_v41, %v159_v42 }
 0x11d   :  { %v162_v44 = vmax.f32 %v160_v43, 0.0 }
 0x11f   :  { %199 = vmatmul.f32.vlgmr.msra.gmra.mxu2 %v162_v44 }
 0x1a2   :  { %v200_v46 = vpop.f32.mrf.mxu2 }
 0x1a3   :  { %v201_v47 = vadd.f32 %v253_v45, %v200_v46 }
 0x1a5   :  { %v243_v48 = vmul.f32 -1.442695, %v201_v47 }
 0x1a7   :  { %254 = vpow2.f32 %v243_v48 }
 0x1ad   :  { %v255_v49 = vpop.eup %254 }
 0x1ae   :  { %v206_v50 = vadd.f32 1.0, %v255_v49 }
 0x1b0   :  { %256 = vrcp.f32 %v206_v50  ;;  %v218_v54 = vand.u32 2147483648, %v206_v50  ;;  %v216_v56 = vand.u32 2147483647, %v206_v50  ;;  %vm212_vm2 = vweird.f32 %v206_v50 }
 0x1b2   :  { %v219_v58 = vor.u32 1.1754944e-38, %v218_v54  ;;  %vm217_vm4 = vcmp.eq.f32.partialorder %v216_v56, 8.507059e+37 }
 0x1b6   :  { %v257_v51 = vpop.eup %256 }
 0x1b7   :  { %v208_v52 = vmul.f32 %v257_v51, %v206_v50  ;;  %vm213_vm1 = vweird.f32 %v257_v51 }
 0x1b8   :  { %vm214_vm3 = vmor %vm212_vm2, %vm213_vm1 }
 0x1b9   :  { %v209_v53 = vsub.f32 1.0, %v208_v52 }
 0x1bb   :  { %v210_v55 = vmul.f32 %v257_v51, %v209_v53 }
 0x1bd   :  { %v211_v57 = vadd.f32 %v257_v51, %v210_v55 }
 0x1bf   :  { %v215_v59 = vsel %vm214_vm3, %v257_v51, %v211_v57 }
 0x1c0   :  { %v220_v60 = vsel %vm217_vm4, %v219_v58, %v215_v59 }
 0x1c1   :  { %222 = vst [vmem:[#allocation10] sm:$0xff] %v220_v60 }
 0x1c2   :  { %233 = dma.vmem_to_hbm [thread:$0]  %s229_s24, 128, %s231_s6, [#allocation4]  }
 0x1c3   :  { %384 = dma.done.wait [#allocation4], 128  }
 0x1c4   :  { %385 = vsyncadd [#allocation4], 4294967168 }
 0x1c5   :  { %238 = vsyncpa [#allocation3], 1 }
 0x1c6   :  { %239 = vsyncpa [#allocation6], 1 }
 0x1c7   :  { %240 = vsyncpa [#allocation9], 1 }
 0x1c8   :  { %241 = vsyncpa [#allocation4], 1 }

</bundles_post_ra>
